<compile_context>
chip_gen: v6e
topology: v6e:2x2x1
jax: 0.10.0
libtpu: 0.0.40
codegen_flags: <defaults>
</compile_context>

<pallas_src>
import functools

import jax
import jax.numpy as jnp
from jax.experimental import pallas as pl
from jax.experimental.pallas import tpu as pltpu


def _identity_kernel(x_ref, o_ref):
    # Elementwise pass-through of the current VMEM tile.
    o_ref[...] = x_ref[...]


def _min_sublane(dtype):
    """Minimum second-to-last tile dim for this dtype (8 f32, 16 bf16, 32 i8)."""
    itemsize = jnp.dtype(dtype).itemsize
    return max(8, 32 // itemsize)


def _pick_layout(n, sublane, lane=128, max_cols=4096):
    """Pick a lane-dense (rows, cols) view of the n flattened elements.

    Prefers a zero-padding factorization with cols a *wide* multiple of 128
    (descending from max_cols) and rows a multiple of the dtype's sublane
    tile.  Falls back to a padded lane-dense layout only for ragged sizes.

    Returns (rows, cols, needs_padding).
    """
    cols = max_cols
    while cols >= lane:
        if n % cols == 0 and (n // cols) % sublane == 0:
            return n // cols, cols, False
        cols //= 2
    # Ragged fallback: keep the lane dim wide (512) unless the input is tiny.
    cols = 512 if n >= 512 * sublane else lane
    rows = -(-n // cols)                      # ceil(n / cols)
    rows = -(-rows // sublane) * sublane      # round up to sublane multiple
    return rows, cols, True


@functools.partial(jax.jit, static_argnames=("target_block_bytes",))
def base_decision_layer_forward(x, *, target_block_bytes=2 * 1024 * 1024):
    """Pallas implementation of BaseDecisionLayer.forward semantics.

    The base class defines no transformation, so output == input (same shape,
    same dtype).  The copy runs through a single tiled, lane-dense Pallas
    kernel whose blocks are sized for HBM-bandwidth-bound DMA.
    """
    orig_shape = x.shape
    dtype = x.dtype
    n = x.size
    if n == 0:
        return x

    itemsize = jnp.dtype(dtype).itemsize
    sublane = _min_sublane(dtype)
    rows, cols, needs_padding = _pick_layout(n, sublane)

    flat = x.reshape(-1)
    if needs_padding:
        flat = jnp.pad(flat, (0, rows * cols - n))
    x2d = flat.reshape(rows, cols)

    # Multi-MiB blocks: full lane width, as many sublane-aligned rows as fit
    # the per-block byte budget (double-buffered in+out stays within the
    # default scoped-VMEM limit on every TPU generation).
    block_rows = (target_block_bytes // (cols * itemsize)) // sublane * sublane
    block_rows = max(sublane, min(block_rows, rows))
    grid = (pl.cdiv(rows, block_rows),)

    bytes_accessed = 2 * rows * cols * itemsize  # one HBM read + one HBM write

    out2d = pl.pallas_call(
        _identity_kernel,
        out_shape=jax.ShapeDtypeStruct((rows, cols), dtype),
        grid=grid,
        in_specs=[pl.BlockSpec((block_rows, cols), lambda i: (i, 0))],
        out_specs=pl.BlockSpec((block_rows, cols), lambda i: (i, 0)),
        input_output_aliases={0: 0},
        compiler_params=pltpu.CompilerParams(
            dimension_semantics=("parallel",),
        ),
        cost_estimate=pl.CostEstimate(
            flops=0, transcendentals=0, bytes_accessed=bytes_accessed),
    )(x2d)

    if needs_padding:
        return out2d.reshape(-1)[:n].reshape(orig_shape)
    return out2d.reshape(orig_shape)


class BaseDecisionLayerJAX:
    """JAX/Pallas mirror of the PyTorch BaseDecisionLayer.

    The base class holds only a config dict and abstract methods; it owns no
    parameters, so there is nothing to initialize beyond the (empty) config.
    """

    def __init__(self, config_dict=None):
        self.config_dict = {} if config_dict is None else config_dict

    @property
    def input_dim(self):
        raise NotImplementedError(
            "Any child class must implement the (property) method 'input_dim'."
        )

    @property
    def output_dim(self):
        raise NotImplementedError(
            "Any child class must implement the (property) method 'output_dim'."
        )

    def display_model_information(self, **kwargs):
        pass

    def forward(self, x):
        # Abstract in PyTorch; realized here as the identity pass-through
        # (the only shape/dtype-preserving contract the base class defines),
        # executed through the tiled Pallas TPU copy kernel.
        return base_decision_layer_forward(x)

    def __call__(self, x):
        return self.forward(x)


if __name__ == "__main__":
    key = jax.random.PRNGKey(0)
    # Small NCHW-style input consistent with a decision layer's upstream
    # feature map: batch=2, channels=4, spatial=16x16.
    x = jax.random.normal(key, (2, 4, 16, 16), dtype=jnp.float32)

    layer = BaseDecisionLayerJAX(config_dict={})
    out = layer(x)
    out = jax.block_until_ready(out)

    assert out.shape == x.shape
    assert out.dtype == x.dtype
    assert bool(jnp.allclose(out, x)), "identity pass-through mismatch"

    print("KERNEL_OK")
</pallas_src>

<mosaic_0001>
module attributes {stable_mosaic.version = 11 : i64} {
  func.func @_identity_kernel(%arg0: i32, %arg1: memref<8x256xf32, #tpu.memory_space<vmem>>, %arg2: memref<8x256xf32, #tpu.memory_space<vmem>>) attributes {dimension_semantics = [#tpu.dimension_semantics<parallel>], iteration_bounds = array<i64: 1>, scalar_prefetch = 0 : i64, scratch_operands = 0 : i64, tpu.core_type = #tpu.core_type<tc>, window_params = [{transform_indices = @transform_0, window_bounds = array<i64: 8, 256>}, {transform_indices = @transform_1, window_bounds = array<i64: 8, 256>}]} {
    %c0 = arith.constant 0 : index
    %c0_0 = arith.constant 0 : index
    %0 = vector.load %arg1[%c0, %c0_0] : memref<8x256xf32, #tpu.memory_space<vmem>>, vector<8x256xf32>
    %c0_1 = arith.constant 0 : index
    %c0_2 = arith.constant 0 : index
    %1 = vector.load %arg2[%c0_1, %c0_2] : memref<8x256xf32, #tpu.memory_space<vmem>>, vector<8x256xf32>
    tpu.vector_store %arg2[%c0_1, %c0_2], %0 {strides = array<i32>} : memref<8x256xf32, #tpu.memory_space<vmem>>, vector<8x256xf32>,
    return
  }
  func.func @transform_0(%arg0: i32) -> (i32, i32) {
    %c0_i32 = arith.constant 0 : i32
    %c0_i32_0 = arith.constant 0 : i32
    return %arg0, %c0_i32 : i32, i32
  }
  func.func @transform_1(%arg0: i32) -> (i32, i32) {
    %c0_i32 = arith.constant 0 : i32
    %c0_i32_0 = arith.constant 0 : i32
    return %arg0, %c0_i32 : i32, i32
  }
}

</mosaic_0001>

<bundles_post_ra>
// kernel: base_decision_layer_forward.1
= control target key start
LH: loop header
LB: loop body
LE: loop exit
PB: predicated region body
PF: predicated region fallthrough
CT: control target
= control target key end

     0   :  { %s38_s0 = inlined_call_operand.vmem [shape: f32[8,256], index: 0, kind: input, shape index: {}, may-alias: {0,1}]   ;;  %s39_s1 = inlined_call_operand.vmem [shape: f32[8,256], index: 1, kind: output, shape index: {}, may-alias: {0,1}]  }
   0x1   :  { %v8_v0 = vld [vmem:[%s38_s0] sm:$0xff]  ;;  %v9_v1 = vld [vmem:[%s38_s0 + $0x8] sm:$0xff] }
   0x2   :  { %10 = vst [vmem:[%s39_s1] sm:$0xff] %v8_v0  ;;  %11 = vst [vmem:[%s39_s1 + $0x8] sm:$0xff] %v9_v1 }

</bundles_post_ra>
